<compile_context>
chip_gen: v7x
topology: tpu7x:2x2x1
jax: 0.10.0
libtpu: 0.0.40
codegen_flags: <defaults>
</compile_context>

<pallas_src>
import jax
import jax.numpy as jnp
from jax.experimental import pallas as pl
from jax.experimental.pallas import tpu as pltpu


def _fused_conv_block_kernel(x_ref, w1_ref, w2_ref, s1_ref, b1_ref,
                             s2_ref, b2_ref, o_ref, xpad_ref, mid_ref):
    # x_ref   : (Nb, H, W*Cin)         lane-dense input slab (Nb images)
    # w1_ref  : (3*W*Cin,  W*Cout)     K-stacked edge-truncated Toeplitz, bf16
    # w2_ref  : (3*W*Cout, W*Cout)     ditto for conv2, bf16
    # s*/b*   : (1, W*Cout)            folded BN scale/bias, pre-tiled over W
    # o_ref   : (Nb, H, W*Cout)        lane-dense output slab
    # xpad_ref: VMEM (Nb*(H+2)+2, W*Cin)  bf16, row-padded (per-image halos)
    # mid_ref : VMEM (Nb*(H+2)+2, W*Cout) bf16, row-padded conv1 output
    Nb, H, WCin = x_ref.shape
    WCout = o_ref.shape[2]
    Hp = H + 2
    M = Nb * Hp          # matmul rows (includes halo rows; extras discarded)

    # Zero only halo / trailing rows (interiors are fully overwritten below).
    zin = jnp.zeros((1, WCin), xpad_ref.dtype)
    zmid = jnp.zeros((1, WCout), mid_ref.dtype)
    for n in range(Nb):
        xpad_ref[n * Hp:n * Hp + 1, :] = zin
        xpad_ref[n * Hp + H + 1:n * Hp + H + 2, :] = zin
        mid_ref[n * Hp:n * Hp + 1, :] = zmid
        mid_ref[n * Hp + H + 1:n * Hp + H + 2, :] = zmid
    xpad_ref[M:M + 2, :] = jnp.zeros((2, WCin), xpad_ref.dtype)
    mid_ref[M:M + 2, :] = jnp.zeros((2, WCout), mid_ref.dtype)

    # Interior stores: full lane width, column-0 aligned (the x-padding lives
    # in the Toeplitz weight, not in the scratch).  Matmul operands are bf16.
    for n in range(Nb):
        xpad_ref[n * Hp + 1:n * Hp + 1 + H, :] = x_ref[n].astype(xpad_ref.dtype)

    def conv_bn_relu(src_ref, w_ref, s, b):
        # kn2row with the 3 kernel rows K-stacked into ONE MXU matmul:
        #   acc[r] = sum_dy src[r+dy] @ W[dy]  ==  concat_dy(src[dy:dy+M]) @ Wstk
        xk = jnp.concatenate([src_ref[dy:dy + M, :] for dy in range(3)], axis=1)
        acc = jnp.dot(xk, w_ref[...], preferred_element_type=jnp.float32)
        # Folded-BN affine + ReLU in f32 (v5e VPU/EUP have no bf16 path).
        return jnp.maximum(acc * s + b, 0.0)

    y1 = conv_bn_relu(xpad_ref, w1_ref, s1_ref[...], b1_ref[...])
    # TODO(synk): Dropout2d(0.3) training-mode channel dropout not implemented
    # (eval-mode identity used, matching module.eval()).
    for n in range(Nb):
        mid_ref[n * Hp + 1:n * Hp + 1 + H, :] = (
            y1[n * Hp:n * Hp + H, :].astype(mid_ref.dtype))

    y2 = conv_bn_relu(mid_ref, w2_ref, s2_ref[...], b2_ref[...])
    for n in range(Nb):
        o_ref[n] = y2[n * Hp:n * Hp + H, :].astype(o_ref.dtype)


def _toeplitz_conv_weights(w_hwio, W):
    """(3,3,Cin,Cout) HWIO -> (3*W*Cin, W*Cout) K-stacked block-Toeplitz.

    The x-direction 'same' zero padding is folded in by truncating the band at
    the image edges:
      B[dy*W*Cin + xs*Cin + ci, x*Cout + co] = w[dy, xs-x+1, ci, co]
        if 0 <= xs-x+1 < 3, else 0.
    """
    kh, kw, cin, cout = w_hwio.shape
    xs = jnp.arange(W)
    x = jnp.arange(W)
    sel = ((xs[None, :, None] - x[None, None, :] + kw // 2)
           == jnp.arange(kw)[:, None, None]).astype(w_hwio.dtype)  # (kw, W, W)
    b = jnp.einsum('dXx,kdio->kXixo', sel, w_hwio)     # (kh, W, Cin, W, Cout)
    return b.reshape(kh * W * cin, W * cout)


def _fold_bn(conv_bias, gamma, beta, mean, var, eps=1e-5):
    s = gamma / jnp.sqrt(var + eps)
    t = beta + (conv_bias - mean) * s
    return s, t


def init_conv_block_params(key, in_ch, out_ch):
    """Deterministic parameter init (PyTorch-like shapes)."""
    k1, k2, k3, k4 = jax.random.split(key, 4)
    fan1 = in_ch * 9
    fan2 = out_ch * 9
    # PyTorch conv weight layout is (out, in, kh, kw); convert to HWIO.
    w1_oihw = jax.random.normal(k1, (out_ch, in_ch, 3, 3), jnp.float32) / jnp.sqrt(fan1)
    w2_oihw = jax.random.normal(k2, (out_ch, out_ch, 3, 3), jnp.float32) / jnp.sqrt(fan2)
    params = dict(
        w1=jnp.transpose(w1_oihw, (2, 3, 1, 0)),
        b1=jax.random.normal(k3, (out_ch,), jnp.float32) * 0.1,
        w2=jnp.transpose(w2_oihw, (2, 3, 1, 0)),
        b2=jax.random.normal(k4, (out_ch,), jnp.float32) * 0.1,
        # BatchNorm2d default init: gamma=1, beta=0, running_mean=0, running_var=1
        g1=jnp.ones((out_ch,), jnp.float32), beta1=jnp.zeros((out_ch,), jnp.float32),
        m1=jnp.zeros((out_ch,), jnp.float32), v1=jnp.ones((out_ch,), jnp.float32),
        g2=jnp.ones((out_ch,), jnp.float32), beta2=jnp.zeros((out_ch,), jnp.float32),
        m2=jnp.zeros((out_ch,), jnp.float32), v2=jnp.ones((out_ch,), jnp.float32),
    )
    return params


def conv_block_forward_nhwc(x_nhwc, params, *, block_n=None):
    """ConvBlock.forward for NHWC input (eval mode); returns NHWC.

    Keep activations NHWC end-to-end where the surrounding graph allows it;
    the NCHW wrapper below adds two full-tensor HBM transposes.
    """
    N, H, W, Cin = x_nhwc.shape
    Cout = params["w1"].shape[-1]
    if block_n is None:
        block_n = next(d for d in (8, 4, 2, 1) if N % d == 0)
    Nb = block_n
    assert N % Nb == 0

    # Lane-dense (N, H, W*Cin): same memory order as NHWC (reshape only).
    x_flat = x_nhwc.reshape(N, H, W * Cin)

    s1, t1 = _fold_bn(params["b1"], params["g1"], params["beta1"],
                      params["m1"], params["v1"])
    s2, t2 = _fold_bn(params["b2"], params["g2"], params["beta2"],
                      params["m2"], params["v2"])

    # bf16 matmul operands (MXU-native); f32 accumulation inside the kernel.
    w1_t = _toeplitz_conv_weights(params["w1"].astype(jnp.float32), W).astype(jnp.bfloat16)
    w2_t = _toeplitz_conv_weights(params["w2"].astype(jnp.float32), W).astype(jnp.bfloat16)

    # Hoisted broadcast: tile the per-channel affine across W -> dense epilogue.
    s1_t = jnp.tile(s1.astype(jnp.float32), W).reshape(1, W * Cout)
    t1_t = jnp.tile(t1.astype(jnp.float32), W).reshape(1, W * Cout)
    s2_t = jnp.tile(s2.astype(jnp.float32), W).reshape(1, W * Cout)
    t2_t = jnp.tile(t2.astype(jnp.float32), W).reshape(1, W * Cout)

    flops = 2 * N * H * (3 * W * Cin + 3 * W * Cout) * (W * Cout)
    bytes_accessed = int(4 * x_flat.size + 4 * N * H * W * Cout
                         + 2 * (w1_t.size + w2_t.size) + 4 * 4 * W * Cout)

    out_flat = pl.pallas_call(
        _fused_conv_block_kernel,
        out_shape=jax.ShapeDtypeStruct((N, H, W * Cout), x_nhwc.dtype),
        grid_spec=pltpu.PrefetchScalarGridSpec(
            num_scalar_prefetch=0,
            grid=(N // Nb,),               # one block of Nb images per step
            in_specs=[
                pl.BlockSpec((Nb, H, W * Cin), lambda n: (n, 0, 0)),
                pl.BlockSpec((3 * W * Cin, W * Cout), lambda n: (0, 0)),
                pl.BlockSpec((3 * W * Cout, W * Cout), lambda n: (0, 0)),
                pl.BlockSpec((1, W * Cout), lambda n: (0, 0)),
                pl.BlockSpec((1, W * Cout), lambda n: (0, 0)),
                pl.BlockSpec((1, W * Cout), lambda n: (0, 0)),
                pl.BlockSpec((1, W * Cout), lambda n: (0, 0)),
            ],
            out_specs=pl.BlockSpec((Nb, H, W * Cout), lambda n: (n, 0, 0)),
            scratch_shapes=[
                pltpu.VMEM((Nb * (H + 2) + 2, W * Cin), jnp.bfloat16),
                pltpu.VMEM((Nb * (H + 2) + 2, W * Cout), jnp.bfloat16),
            ],
        ),
        compiler_params=pltpu.CompilerParams(
            dimension_semantics=("parallel",)),
        cost_estimate=pl.CostEstimate(
            flops=flops, transcendentals=0, bytes_accessed=bytes_accessed),
    )(x_flat, w1_t, w2_t, s1_t, t1_t, s2_t, t2_t)

    return out_flat.reshape(N, H, W, Cout)


def conv_block_forward(x_nchw, params):
    """Equivalent of ConvBlock.forward(x) for NCHW input (eval mode)."""
    y = conv_block_forward_nhwc(jnp.transpose(x_nchw, (0, 2, 3, 1)), params)
    return jnp.transpose(y, (0, 3, 1, 2))


def _reference_forward(x_nchw, params):
    """Pure-JAX reference (lax conv) for correctness checking."""
    def conv_bn_relu_ref(x, w_hwio, cb, g, b, m, v):
        y = jax.lax.conv_general_dilated(
            x, w_hwio, window_strides=(1, 1), padding="SAME",
            dimension_numbers=("NHWC", "HWIO", "NHWC"))
        y = y + cb
        y = (y - m) / jnp.sqrt(v + 1e-5) * g + b
        return jnp.maximum(y, 0.0)

    x = jnp.transpose(x_nchw, (0, 2, 3, 1))
    y = conv_bn_relu_ref(x, params["w1"], params["b1"], params["g1"],
                         params["beta1"], params["m1"], params["v1"])
    y = conv_bn_relu_ref(y, params["w2"], params["b2"], params["g2"],
                         params["beta2"], params["m2"], params["v2"])
    return jnp.transpose(y, (0, 3, 1, 2))


if __name__ == "__main__":
    key = jax.random.PRNGKey(0)
    kx, kp = jax.random.split(key)

    N, in_ch, out_ch, H, W = 2, 4, 8, 16, 16
    x = jax.random.normal(kx, (N, in_ch, H, W), jnp.float32)   # NCHW, like PyTorch
    params = init_conv_block_params(kp, in_ch, out_ch)

    out = jax.block_until_ready(conv_block_forward(x, params))
    assert out.shape == (N, out_ch, H, W), out.shape

    ref = jax.block_until_ready(_reference_forward(x, params))
    err = jnp.max(jnp.abs(out - ref))
    # bf16 matmul operands + bf16 intermediate activations -> loosened tolerance.
    assert jnp.allclose(out, ref, rtol=3e-2, atol=3e-2), f"max abs err {err}"

    print("KERNEL_OK")
</pallas_src>

<mosaic_0001>
module attributes {stable_mosaic.version = 11 : i64} {
  func.func @_fused_conv_block_kernel(%arg0: i32, %arg1: memref<2x16x64xf32, #tpu.memory_space<vmem>>, %arg2: memref<192x128xbf16, #tpu.memory_space<vmem>>, %arg3: memref<384x128xbf16, #tpu.memory_space<vmem>>, %arg4: memref<1x128xf32, #tpu.memory_space<vmem>>, %arg5: memref<1x128xf32, #tpu.memory_space<vmem>>, %arg6: memref<1x128xf32, #tpu.memory_space<vmem>>, %arg7: memref<1x128xf32, #tpu.memory_space<vmem>>, %arg8: memref<2x16x128xf32, #tpu.memory_space<vmem>>, %arg9: memref<38x64xbf16, #tpu.memory_space<vmem>>, %arg10: memref<38x128xbf16, #tpu.memory_space<vmem>>) attributes {dimension_semantics = [#tpu.dimension_semantics<parallel>], iteration_bounds = array<i64: 1>, scalar_prefetch = 0 : i64, scratch_operands = 2 : i64, tpu.core_type = #tpu.core_type<tc>, window_params = [{transform_indices = @transform_0, window_bounds = array<i64: 2, 16, 64>}, {pipeline_mode = #tpu.pipeline_mode<synchronous>, transform_indices = @transform_1, window_bounds = array<i64: 192, 128>}, {pipeline_mode = #tpu.pipeline_mode<synchronous>, transform_indices = @transform_2, window_bounds = array<i64: 384, 128>}, {pipeline_mode = #tpu.pipeline_mode<synchronous>, transform_indices = @transform_3, window_bounds = array<i64: 1, 128>}, {pipeline_mode = #tpu.pipeline_mode<synchronous>, transform_indices = @transform_4, window_bounds = array<i64: 1, 128>}, {pipeline_mode = #tpu.pipeline_mode<synchronous>, transform_indices = @transform_5, window_bounds = array<i64: 1, 128>}, {pipeline_mode = #tpu.pipeline_mode<synchronous>, transform_indices = @transform_6, window_bounds = array<i64: 1, 128>}, {transform_indices = @transform_7, window_bounds = array<i64: 2, 16, 128>}]} {
    %cst = arith.constant 0.000000e+00 : bf16
    %0 = vector.broadcast %cst : bf16 to vector<1x64xbf16>
    %cst_0 = arith.constant 0.000000e+00 : bf16
    %1 = vector.broadcast %cst_0 : bf16 to vector<1x128xbf16>
    %c0 = arith.constant 0 : index
    %c0_1 = arith.constant 0 : index
    %2 = vector.load %arg9[%c0, %c0_1] : memref<38x64xbf16, #tpu.memory_space<vmem>>, vector<1x64xbf16>
    tpu.vector_store %arg9[%c0, %c0_1], %0 {strides = array<i32>} : memref<38x64xbf16, #tpu.memory_space<vmem>>, vector<1x64xbf16>,
    %c17 = arith.constant 17 : index
    %c0_2 = arith.constant 0 : index
    %3 = vector.load %arg9[%c17, %c0_2] : memref<38x64xbf16, #tpu.memory_space<vmem>>, vector<1x64xbf16>
    tpu.vector_store %arg9[%c17, %c0_2], %0 {strides = array<i32>} : memref<38x64xbf16, #tpu.memory_space<vmem>>, vector<1x64xbf16>,
    %c0_3 = arith.constant 0 : index
    %c0_4 = arith.constant 0 : index
    %4 = vector.load %arg10[%c0_3, %c0_4] : memref<38x128xbf16, #tpu.memory_space<vmem>>, vector<1x128xbf16>
    tpu.vector_store %arg10[%c0_3, %c0_4], %1 {strides = array<i32>} : memref<38x128xbf16, #tpu.memory_space<vmem>>, vector<1x128xbf16>,
    %c17_5 = arith.constant 17 : index
    %c0_6 = arith.constant 0 : index
    %5 = vector.load %arg10[%c17_5, %c0_6] : memref<38x128xbf16, #tpu.memory_space<vmem>>, vector<1x128xbf16>
    tpu.vector_store %arg10[%c17_5, %c0_6], %1 {strides = array<i32>} : memref<38x128xbf16, #tpu.memory_space<vmem>>, vector<1x128xbf16>,
    %c18 = arith.constant 18 : index
    %c0_7 = arith.constant 0 : index
    %6 = vector.load %arg9[%c18, %c0_7] : memref<38x64xbf16, #tpu.memory_space<vmem>>, vector<1x64xbf16>
    tpu.vector_store %arg9[%c18, %c0_7], %0 {strides = array<i32>} : memref<38x64xbf16, #tpu.memory_space<vmem>>, vector<1x64xbf16>,
    %c35 = arith.constant 35 : index
    %c0_8 = arith.constant 0 : index
    %7 = vector.load %arg9[%c35, %c0_8] : memref<38x64xbf16, #tpu.memory_space<vmem>>, vector<1x64xbf16>
    tpu.vector_store %arg9[%c35, %c0_8], %0 {strides = array<i32>} : memref<38x64xbf16, #tpu.memory_space<vmem>>, vector<1x64xbf16>,
    %c18_9 = arith.constant 18 : index
    %c0_10 = arith.constant 0 : index
    %8 = vector.load %arg10[%c18_9, %c0_10] : memref<38x128xbf16, #tpu.memory_space<vmem>>, vector<1x128xbf16>
    tpu.vector_store %arg10[%c18_9, %c0_10], %1 {strides = array<i32>} : memref<38x128xbf16, #tpu.memory_space<vmem>>, vector<1x128xbf16>,
    %c35_11 = arith.constant 35 : index
    %c0_12 = arith.constant 0 : index
    %9 = vector.load %arg10[%c35_11, %c0_12] : memref<38x128xbf16, #tpu.memory_space<vmem>>, vector<1x128xbf16>
    tpu.vector_store %arg10[%c35_11, %c0_12], %1 {strides = array<i32>} : memref<38x128xbf16, #tpu.memory_space<vmem>>, vector<1x128xbf16>,
    %cst_13 = arith.constant 0.000000e+00 : bf16
    %10 = vector.broadcast %cst_13 : bf16 to vector<2x64xbf16>
    %c36 = arith.constant 36 : index
    %c0_14 = arith.constant 0 : index
    %11 = vector.load %arg9[%c36, %c0_14] : memref<38x64xbf16, #tpu.memory_space<vmem>>, vector<2x64xbf16>
    tpu.vector_store %arg9[%c36, %c0_14], %10 {strides = array<i32>} : memref<38x64xbf16, #tpu.memory_space<vmem>>, vector<2x64xbf16>,
    %cst_15 = arith.constant 0.000000e+00 : bf16
    %12 = vector.broadcast %cst_15 : bf16 to vector<2x128xbf16>
    %c36_16 = arith.constant 36 : index
    %c0_17 = arith.constant 0 : index
    %13 = vector.load %arg10[%c36_16, %c0_17] : memref<38x128xbf16, #tpu.memory_space<vmem>>, vector<2x128xbf16>
    tpu.vector_store %arg10[%c36_16, %c0_17], %12 {strides = array<i32>} : memref<38x128xbf16, #tpu.memory_space<vmem>>, vector<2x128xbf16>,
    %c0_18 = arith.constant 0 : index
    %c0_19 = arith.constant 0 : index
    %c0_20 = arith.constant 0 : index
    %14 = vector.load %arg1[%c0_18, %c0_19, %c0_20] : memref<2x16x64xf32, #tpu.memory_space<vmem>>, vector<1x16x64xf32>
    %15 = vector.shape_cast %14 : vector<1x16x64xf32> to vector<16x64xf32>
    %16 = arith.truncf %15 : vector<16x64xf32> to vector<16x64xbf16>
    %c1 = arith.constant 1 : index
    %c0_21 = arith.constant 0 : index
    %17 = vector.load %arg9[%c1, %c0_21] : memref<38x64xbf16, #tpu.memory_space<vmem>>, vector<16x64xbf16>
    tpu.vector_store %arg9[%c1, %c0_21], %16 {strides = array<i32>} : memref<38x64xbf16, #tpu.memory_space<vmem>>, vector<16x64xbf16>,
    %c1_22 = arith.constant 1 : index
    %c0_23 = arith.constant 0 : index
    %c0_24 = arith.constant 0 : index
    %18 = vector.load %arg1[%c1_22, %c0_23, %c0_24] : memref<2x16x64xf32, #tpu.memory_space<vmem>>, vector<1x16x64xf32>
    %19 = vector.shape_cast %18 : vector<1x16x64xf32> to vector<16x64xf32>
    %20 = arith.truncf %19 : vector<16x64xf32> to vector<16x64xbf16>
    %c19 = arith.constant 19 : index
    %c0_25 = arith.constant 0 : index
    %21 = vector.load %arg9[%c19, %c0_25] : memref<38x64xbf16, #tpu.memory_space<vmem>>, vector<16x64xbf16>
    tpu.vector_store %arg9[%c19, %c0_25], %20 {strides = array<i32>} : memref<38x64xbf16, #tpu.memory_space<vmem>>, vector<16x64xbf16>,
    %c0_26 = arith.constant 0 : index
    %c0_27 = arith.constant 0 : index
    %22 = vector.load %arg4[%c0_26, %c0_27] : memref<1x128xf32, #tpu.memory_space<vmem>>, vector<1x128xf32>
    %c0_28 = arith.constant 0 : index
    %c0_29 = arith.constant 0 : index
    %23 = vector.load %arg5[%c0_28, %c0_29] : memref<1x128xf32, #tpu.memory_space<vmem>>, vector<1x128xf32>
    %c0_30 = arith.constant 0 : index
    %c0_31 = arith.constant 0 : index
    %24 = vector.load %arg9[%c0_30, %c0_31] : memref<38x64xbf16, #tpu.memory_space<vmem>>, vector<36x64xbf16>
    %c1_32 = arith.constant 1 : index
    %c0_33 = arith.constant 0 : index
    %25 = vector.load %arg9[%c1_32, %c0_33] : memref<38x64xbf16, #tpu.memory_space<vmem>>, vector<36x64xbf16>
    %c2 = arith.constant 2 : index
    %c0_34 = arith.constant 0 : index
    %26 = vector.load %arg9[%c2, %c0_34] : memref<38x64xbf16, #tpu.memory_space<vmem>>, vector<36x64xbf16>
    %27 = tpu.concatenate %24, %25, %26 in 1 : vector<36x64xbf16>, vector<36x64xbf16>, vector<36x64xbf16> -> vector<36x192xbf16>
    %c0_35 = arith.constant 0 : index
    %c0_36 = arith.constant 0 : index
    %28 = vector.load %arg2[%c0_35, %c0_36] : memref<192x128xbf16, #tpu.memory_space<vmem>>, vector<192x128xbf16>
    %cst_37 = arith.constant dense<0.000000e+00> : vector<36x128xf32>
    %29 = tpu.matmul %27, %28, %cst_37 {dimension_numbers = #tpu.dot_dimension_numbers<[1], [0], [0], [1], [0, 0, 1, 1], [], []>} : vector<36x192xbf16>, vector<192x128xbf16>, vector<36x128xf32> -> vector<36x128xf32>
    %30 = vector.broadcast %22 : vector<1x128xf32> to vector<36x128xf32>
    %31 = arith.mulf %29, %30 : vector<36x128xf32>
    %32 = vector.broadcast %23 : vector<1x128xf32> to vector<36x128xf32>
    %33 = arith.addf %31, %32 : vector<36x128xf32>
    %cst_38 = arith.constant 0.000000e+00 : f32
    %34 = vector.broadcast %cst_38 : f32 to vector<36x128xf32>
    %35 = arith.maximumf %33, %34 : vector<36x128xf32>
    %36 = vector.extract_strided_slice %35 {offsets = [0, 0], sizes = [16, 128], strides = [1, 1]} : vector<36x128xf32> to vector<16x128xf32>
    %37 = arith.truncf %36 : vector<16x128xf32> to vector<16x128xbf16>
    %c1_39 = arith.constant 1 : index
    %c0_40 = arith.constant 0 : index
    %38 = vector.load %arg10[%c1_39, %c0_40] : memref<38x128xbf16, #tpu.memory_space<vmem>>, vector<16x128xbf16>
    tpu.vector_store %arg10[%c1_39, %c0_40], %37 {strides = array<i32>} : memref<38x128xbf16, #tpu.memory_space<vmem>>, vector<16x128xbf16>,
    %39 = vector.extract_strided_slice %35 {offsets = [18, 0], sizes = [16, 128], strides = [1, 1]} : vector<36x128xf32> to vector<16x128xf32>
    %40 = arith.truncf %39 : vector<16x128xf32> to vector<16x128xbf16>
    %c19_41 = arith.constant 19 : index
    %c0_42 = arith.constant 0 : index
    %41 = vector.load %arg10[%c19_41, %c0_42] : memref<38x128xbf16, #tpu.memory_space<vmem>>, vector<16x128xbf16>
    tpu.vector_store %arg10[%c19_41, %c0_42], %40 {strides = array<i32>} : memref<38x128xbf16, #tpu.memory_space<vmem>>, vector<16x128xbf16>,
    %c0_43 = arith.constant 0 : index
    %c0_44 = arith.constant 0 : index
    %42 = vector.load %arg6[%c0_43, %c0_44] : memref<1x128xf32, #tpu.memory_space<vmem>>, vector<1x128xf32>
    %c0_45 = arith.constant 0 : index
    %c0_46 = arith.constant 0 : index
    %43 = vector.load %arg7[%c0_45, %c0_46] : memref<1x128xf32, #tpu.memory_space<vmem>>, vector<1x128xf32>
    %c0_47 = arith.constant 0 : index
    %c0_48 = arith.constant 0 : index
    %44 = vector.load %arg10[%c0_47, %c0_48] : memref<38x128xbf16, #tpu.memory_space<vmem>>, vector<36x128xbf16>
    %c1_49 = arith.constant 1 : index
    %c0_50 = arith.constant 0 : index
    %45 = vector.load %arg10[%c1_49, %c0_50] : memref<38x128xbf16, #tpu.memory_space<vmem>>, vector<36x128xbf16>
    %c2_51 = arith.constant 2 : index
    %c0_52 = arith.constant 0 : index
    %46 = vector.load %arg10[%c2_51, %c0_52] : memref<38x128xbf16, #tpu.memory_space<vmem>>, vector<36x128xbf16>
    %47 = tpu.concatenate %44, %45, %46 in 1 : vector<36x128xbf16>, vector<36x128xbf16>, vector<36x128xbf16> -> vector<36x384xbf16>
    %c0_53 = arith.constant 0 : index
    %c0_54 = arith.constant 0 : index
    %48 = vector.load %arg3[%c0_53, %c0_54] : memref<384x128xbf16, #tpu.memory_space<vmem>>, vector<384x128xbf16>
    %cst_55 = arith.constant dense<0.000000e+00> : vector<36x128xf32>
    %49 = tpu.matmul %47, %48, %cst_55 {dimension_numbers = #tpu.dot_dimension_numbers<[1], [0], [0], [1], [0, 0, 1, 1], [], []>} : vector<36x384xbf16>, vector<384x128xbf16>, vector<36x128xf32> -> vector<36x128xf32>
    %50 = vector.broadcast %42 : vector<1x128xf32> to vector<36x128xf32>
    %51 = arith.mulf %49, %50 : vector<36x128xf32>
    %52 = vector.broadcast %43 : vector<1x128xf32> to vector<36x128xf32>
    %53 = arith.addf %51, %52 : vector<36x128xf32>
    %cst_56 = arith.constant 0.000000e+00 : f32
    %54 = vector.broadcast %cst_56 : f32 to vector<36x128xf32>
    %55 = arith.maximumf %53, %54 : vector<36x128xf32>
    %56 = vector.extract_strided_slice %55 {offsets = [0, 0], sizes = [16, 128], strides = [1, 1]} : vector<36x128xf32> to vector<16x128xf32>
    %c0_57 = arith.constant 0 : index
    %c0_58 = arith.constant 0 : index
    %c0_59 = arith.constant 0 : index
    %57 = vector.load %arg8[%c0_57, %c0_58, %c0_59] : memref<2x16x128xf32, #tpu.memory_space<vmem>>, vector<1x16x128xf32>
    %58 = vector.shape_cast %57 : vector<1x16x128xf32> to vector<16x128xf32>
    %59 = vector.shape_cast %56 : vector<16x128xf32> to vector<1x16x128xf32>
    tpu.vector_store %arg8[%c0_57, %c0_58, %c0_59], %59 {strides = array<i32>} : memref<2x16x128xf32, #tpu.memory_space<vmem>>, vector<1x16x128xf32>,
    %60 = vector.extract_strided_slice %55 {offsets = [18, 0], sizes = [16, 128], strides = [1, 1]} : vector<36x128xf32> to vector<16x128xf32>
    %c1_60 = arith.constant 1 : index
    %c0_61 = arith.constant 0 : index
    %c0_62 = arith.constant 0 : index
    %61 = vector.load %arg8[%c1_60, %c0_61, %c0_62] : memref<2x16x128xf32, #tpu.memory_space<vmem>>, vector<1x16x128xf32>
    %62 = vector.shape_cast %61 : vector<1x16x128xf32> to vector<16x128xf32>
    %63 = vector.shape_cast %60 : vector<16x128xf32> to vector<1x16x128xf32>
    tpu.vector_store %arg8[%c1_60, %c0_61, %c0_62], %63 {strides = array<i32>} : memref<2x16x128xf32, #tpu.memory_space<vmem>>, vector<1x16x128xf32>,
    return
  }
  func.func @transform_0(%arg0: i32) -> (i32, i32, i32) {
    %c0_i32 = arith.constant 0 : i32
    %c0_i32_0 = arith.constant 0 : i32
    %c0_i32_1 = arith.constant 0 : i32
    return %arg0, %c0_i32, %c0_i32_0 : i32, i32, i32
  }
  func.func @transform_1(%arg0: i32) -> (i32, i32) {
    %c0_i32 = arith.constant 0 : i32
    %c0_i32_0 = arith.constant 0 : i32
    %c0_i32_1 = arith.constant 0 : i32
    return %c0_i32, %c0_i32_0 : i32, i32
  }
  func.func @transform_2(%arg0: i32) -> (i32, i32) {
    %c0_i32 = arith.constant 0 : i32
    %c0_i32_0 = arith.constant 0 : i32
    %c0_i32_1 = arith.constant 0 : i32
    return %c0_i32, %c0_i32_0 : i32, i32
  }
  func.func @transform_3(%arg0: i32) -> (i32, i32) {
    %c0_i32 = arith.constant 0 : i32
    %c0_i32_0 = arith.constant 0 : i32
    %c0_i32_1 = arith.constant 0 : i32
    return %c0_i32, %c0_i32_0 : i32, i32
  }
  func.func @transform_4(%arg0: i32) -> (i32, i32) {
    %c0_i32 = arith.constant 0 : i32
    %c0_i32_0 = arith.constant 0 : i32
    %c0_i32_1 = arith.constant 0 : i32
    return %c0_i32, %c0_i32_0 : i32, i32
  }
  func.func @transform_5(%arg0: i32) -> (i32, i32) {
    %c0_i32 = arith.constant 0 : i32
    %c0_i32_0 = arith.constant 0 : i32
    %c0_i32_1 = arith.constant 0 : i32
    return %c0_i32, %c0_i32_0 : i32, i32
  }
  func.func @transform_6(%arg0: i32) -> (i32, i32) {
    %c0_i32 = arith.constant 0 : i32
    %c0_i32_0 = arith.constant 0 : i32
    %c0_i32_1 = arith.constant 0 : i32
    return %c0_i32, %c0_i32_0 : i32, i32
  }
  func.func @transform_7(%arg0: i32) -> (i32, i32, i32) {
    %c0_i32 = arith.constant 0 : i32
    %c0_i32_0 = arith.constant 0 : i32
    %c0_i32_1 = arith.constant 0 : i32
    return %arg0, %c0_i32, %c0_i32_0 : i32, i32, i32
  }
}

</mosaic_0001>

<bundles_post_ra>
// kernel: tpu_custom_call.1
= control target key start
LH: loop header
LB: loop body
LE: loop exit
PB: predicated region body
PF: predicated region fallthrough
CT: control target
= control target key end

     0   :  { %12 = vsyncpa [#allocation5], 0  ;;  %s1512_s0 = inlined_call_operand.hbm [shape: f32[2,16,64], index: 0, kind: input, shape index: {}]   ;;  %s1513_s1 = inlined_call_operand.hbm [shape: bf16[192,128], index: 1, kind: input, shape index: {}]   ;;  %s1514_s2 = inlined_call_operand.hbm [shape: bf16[384,128], index: 2, kind: input, shape index: {}]   ;;  %s1515_s3 = inlined_call_operand.vmem [shape: f32[1,128], index: 3, kind: input, shape index: {}]   ;;  %s1516_s4 = inlined_call_operand.vmem [shape: f32[1,128], index: 4, kind: input, shape index: {}]   ;;  %s1517_s5 = inlined_call_operand.vmem [shape: f32[1,128], index: 5, kind: input, shape index: {}]   ;;  %s1518_s6 = inlined_call_operand.vmem [shape: f32[1,128], index: 6, kind: input, shape index: {}]   ;;  %s1519_s7 = inlined_call_operand.hbm [shape: f32[2,16,128], index: 7, kind: output, shape index: {}]  }
   0x1   :  { %13 = vsyncpa [#allocation8], 0 }
   0x2   :  { %14 = vsyncpa [#allocation6], 0  ;;  %s1257_s24 = smov [#allocation7]   ;;  %s1163_s28 = scalar_lea.hbm %s1513_s1, 1536 }
   0x3   :  { %s32_s25 = sshll.u32 %s1257_s24, 4  ;;  %p1164_p0 = scmp.ne.s32.totalorder %s1513_s1, %s1163_s28  ;;  %s33_s25 = int_to_ptr.vmem [resolvable:$true] %s32_s25 }
   0x4   :  { %p1167_p1 = scmp.lt.u32.totalorder %s1163_s28, %s1513_s1 }
   0x6   :  { %p1169_p2 = pnand %p1167_p1, %p1164_p0 }
   0x8   :  { %1172 = shalt.err (!%p1169_p2)
}
   0x9   :  { %s1173_s10 = scalar_lea.vmem %s33_s25, 1536  ;;  %p1178_p4 = scmp.lt.s32.totalorder %s33_s25, %s33_s25 }
   0xa   :  { %p1174_p3 = scmp.ne.s32.totalorder %s33_s25, %s1173_s10  ;;  %p1179_p5 = scmp.lt.s32.totalorder %s1173_s10, %s1173_s10 }
   0xc   :  { %p1180_p6 = por %p1179_p5, %p1178_p4 }
   0xe   :  { %p1181_p7 = pnand %p1180_p6, %p1174_p3 }
  0x10   :  { %1184 = shalt.err (!%p1181_p7)
}
  0x11   :  { %s1258_s11 = smov 64   ;;  %s1259_s12 = smov 4  }
  0x12   :  { %38 = dma.hbm_to_vmem [thread:$0]  %s1513_s1, 1536, %s33_s25, [#allocation8], %s1258_s11, %s1258_s11, %s1259_s12  }
  0x13   :  { %s1260_s15 = smov [#allocation4]   ;;  %s1185_s19 = scalar_lea.hbm %s1512_s0, 512 }
  0x14   :  { %s20_s16 = sshll.u32 %s1260_s15, 4  ;;  %p1186_p8 = scmp.ne.s32.totalorder %s1512_s0, %s1185_s19  ;;  %s21_s16 = int_to_ptr.vmem [resolvable:$true] %s20_s16 }
  0x15   :  { %p1189_p9 = scmp.lt.u32.totalorder %s1185_s19, %s1512_s0 }
  0x17   :  { %p1191_p10 = pnand %p1189_p9, %p1186_p8 }
  0x19   :  { %1194 = shalt.err (!%p1191_p10)
}
  0x1a   :  { %s1195_s24 = scalar_lea.vmem %s21_s16, 512  ;;  %p1200_p12 = scmp.lt.s32.totalorder %s21_s16, %s21_s16 }
  0x1b   :  { %p1196_p11 = scmp.ne.s32.totalorder %s21_s16, %s1195_s24  ;;  %p1201_p13 = scmp.lt.s32.totalorder %s1195_s24, %s1195_s24 }
  0x1d   :  { %p1202_p0 = por %p1201_p13, %p1200_p12 }
  0x1f   :  { %p1203_p1 = pnand %p1202_p0, %p1196_p11 }
  0x21   :  { %1206 = shalt.err (!%p1203_p1)
}
  0x22   :  { %s1261_s1 = smov 128   ;;  %s1262_s25 = smov 8  }
  0x23   :  { %26 = dma.hbm_to_vmem [thread:$0]  %s1512_s0, 512, %s21_s16, [#allocation5], %s1261_s1, %s1261_s1, %s1262_s25  }
  0x24   :  { %s1263_s28 = smov [#allocation9]   ;;  %s1207_s9 = scalar_lea.hbm %s1514_s2, 3072 }
  0x25   :  { %s44_s29 = sshll.u32 %s1263_s28, 4  ;;  %p1208_p2 = scmp.ne.s32.totalorder %s1514_s2, %s1207_s9  ;;  %s45_s29 = int_to_ptr.vmem [resolvable:$true] %s44_s29 }
  0x26   :  { %p1211_p3 = scmp.lt.u32.totalorder %s1207_s9, %s1514_s2 }
  0x28   :  { %p1213_p4 = pnand %p1211_p3, %p1208_p2 }
  0x2a   :  { %1216 = shalt.err (!%p1213_p4)
}
  0x2b   :  { %s1217_s17 = scalar_lea.vmem %s45_s29, 3072  ;;  %p1222_p6 = scmp.lt.s32.totalorder %s45_s29, %s45_s29 }
  0x2c   :  { %p1218_p5 = scmp.ne.s32.totalorder %s45_s29, %s1217_s17  ;;  %p1223_p7 = scmp.lt.s32.totalorder %s1217_s17, %s1217_s17 }
  0x2e   :  { %p1224_p8 = por %p1223_p7, %p1222_p6 }
  0x30   :  { %p1225_p9 = pnand %p1224_p8, %p1218_p5 }
  0x32   :  { %1228 = shalt.err (!%p1225_p9)
}
  0x33   :  { %50 = dma.hbm_to_vmem [thread:$0]  %s1514_s2, 3072, %s45_s29, [#allocation8], %s1258_s11, %s1258_s11, %s1259_s12  }
  0x34   :  { %1251 = dma.done.wait [#allocation5], 512  }
  0x35   :  { %1252 = vsyncadd [#allocation5], 4294966784 }
  0x36   :  { %1253 = dma.done.wait [#allocation8], 4608  }
  0x37   :  { %1254 = vsyncadd [#allocation8], 4294962688  ;;  %vm69_vm0 = vcmask 516096   ;;  %vm70_vm1 = vsmask.f32 256  ;;  %vm89_vm3 = vcmask 517121  }
  0x38   :  { %vm75_vm2 = vsmask.f32 7938  ;;  %vm90_vm4 = vsmask.f32 1280  ;;  %vm1354_vm5 = vmand %vm69_vm0, %vm70_vm1  ;;  %v1264_v2 = vmov 0   ;;  %vm142_vm10 = vcmask 519168  }
  0x39   :  { %vm1359_vm6 = vmand %vm69_vm0, %vm75_vm2  ;;  %376 = vmatprep.subr.bf16.mxu0 %v1264_v2  ;;  %vm95_vm8 = vsmask.f32 7942  ;;  %vm120_vm9 = vsmask.f32 4368  ;;  %v72_v3 = vld [vmem:[#allocation2] sm:$0x1] }
  0x3a   :  { %vm91_vm7 = vmand %vm89_vm3, %vm90_vm4  ;;  %v77_v4 = vld [vmem:[#allocation2 + $0x8] sm:$0x1]  ;;  %v92_v5 = vld [vmem:[#allocation2 + $0x8] sm:$0x2]  ;;  %v73_v6 = vsel %vm1354_vm5, 0, %v72_v3  ;;  %vm185_vm12 = vcmask 519169  }
  0x3b   :  { %v78_v7 = vsel %vm1359_vm6, 0, %v77_v4  ;;  %v93_v8 = vsel %vm91_vm7, 0, %v92_v5  ;;  %v112_v9 = vld [vmem:[#allocation4] sm:$0xff]  ;;  %v113_v10 = vld [vmem:[#allocation4 + $0x8] sm:$0xff]  ;;  %v153_v11 = vld [vmem:[#allocation4 + $0x10] sm:$0xff]  ;;  %vm191_vm14 = vcmask 517120  }
  0x3c   :  { %74 = vst [vmem:[#allocation2] sm:$0x1] %v73_v6  ;;  %79 = vst [vmem:[#allocation2 + $0x8] sm:$0x1] %v78_v7  ;;  %v1025_v12 = vpack.c.bf16 %v112_v9, %v112_v9  ;;  %v1026_v13 = vpack.c.bf16 %v113_v10, %v113_v10  ;;  %v154_v14 = vld [vmem:[#allocation4 + $0x18] sm:$0xff]  ;;  %v1027_v15 = vpack.c.bf16 %v153_v11, %v153_v11  ;;  %v1121_v23 = vld [vmem:[#allocation7] sm:$0xff]  }
  0x3d   :  { %94 = vst [vmem:[#allocation2 + $0x8] sm:$0x2] %v93_v8  ;;  %vm161_vm11 = vsmask.f32 5392  ;;  %v97_v16 = vld [vmem:[#allocation2 + $0x10] sm:$0x2]  ;;  %v1028_v17 = vpack.c.bf16 %v154_v14, %v154_v14  ;;  %vm1372_vm13 = vmand %vm89_vm3, %vm95_vm8  ;;  %377 = vmatpush1.bf16.msra.mxu0 %v1121_v23 }
  0x3e   :  { %v123_v19 = vshrl.u32 %v1025_v12, 16  ;;  %v126_v20 = vshll.u32 %v1025_v12, 16  ;;  %v131_v21 = vshrl.u32 %v1026_v13, 16  ;;  %v134_v22 = vshll.u32 %v1026_v13, 16  ;;  %vm1378_vm15 = vmor %vm70_vm1, %vm120_vm9  ;;  %v1122_v33 = vld [vmem:[#allocation7 + $0x8] sm:$0xff]   ;;  %378 = vmatprep.subr.bf16.mxu0 %v1264_v2  ;;  %v1123_v52 = vld [vmem:[#allocation7 + $0x10] sm:$0xff]  }
  0x3f   :  { %v164_v25 = vshrl.u32 %v1027_v15, 16  ;;  %v167_v26 = vshll.u32 %v1027_v15, 16  ;;  %v173_v27 = vshrl.u32 %v1028_v17, 16  ;;  %v176_v28 = vshll.u32 %v1028_v17, 16  ;;  %vm1384_vm0 = vmand %vm142_vm10, %vm75_vm2  ;;  %v1124_v58 = vld [vmem:[#allocation7 + $0x18] sm:$0xff]   ;;  %v1125_v60 = vld [vmem:[#allocation7 + $0x20] sm:$0xff]  }
  0x40   :  { %v125_v29 = vrot.slane %v123_v19, 7  ;;  %v133_v30 = vrot.slane %v131_v21, 7  ;;  %v98_v32 = vsel %vm1372_vm13, 0, %v97_v16  ;;  %vm1392_vm3 = vmor %vm90_vm4, %vm161_vm11  ;;  %vm254_vm9 = vcmask 1046528   ;;  %v1126_v0 = vld [vmem:[#allocation7 + $0x28] sm:$0xff]   ;;  %v1127_v17 = vld [vmem:[#allocation7 + $0x30] sm:$0xff]  }
  0x41   :  { %v166_v35 = vrot.slane %v164_v25, 6  ;;  %v169_v36 = vrot.slane %v167_v26, 7  ;;  %v175_v37 = vrot.slane %v173_v27, 6  ;;  %v178_v38 = vrot.slane %v176_v28, 7  ;;  %99 = vst [vmem:[#allocation2 + $0x10] sm:$0x2] %v98_v32  ;;  %vm1399_vm6 = vmand %vm185_vm12, %vm95_vm8  ;;  %379 = vmatpush1.bf16.msra.mxu0 %v1122_v33 }
  0x42   :  { %v128_v39 = vor.u32 %v126_v20, %v125_v29  ;;  %v129_v40 = vrot.slane %v125_v29, 4  ;;  %v136_v41 = vor.u32 %v134_v22, %v133_v30  ;;  %v138_v42 = vrot.slane %v133_v30, 4  ;;  %vm192_vm7 = vmand %vm191_vm14, %vm90_vm4  ;;  %380 = vmatprep.subr.bf16.mxu0 %v1264_v2  ;;  %v1128_v23 = vld [vmem:[#allocation7 + $0x38] sm:$0xff]   ;;  %v82_v28 = vld [vmem:[#allocation3] sm:$0x1] }
  0x43   :  { %v144_v44 = vld [vmem:[#allocation2] sm:$0xf]  ;;  %v149_v45 = vld [vmem:[#allocation2 + $0x8] sm:$0x1]  ;;  %v170_v46 = vor.u32 %v169_v36, %v166_v35  ;;  %v179_v47 = vor.u32 %v178_v38, %v175_v37  ;;  %vm80_vm11 = vcmask 1040384   ;;  %v1130_v32 = vld [vmem:[#allocation7 + $0x48] sm:$0xff]  }
  0x44   :  { %v187_v48 = vld [vmem:[#allocation2 + $0x8] sm:$0xe]  ;;  %v137_v49 = vsel %vm1378_vm15, %v129_v40, %v136_v41  ;;  %v145_v50 = vsel %vm1384_vm0, %v128_v39, %v144_v44  ;;  %v150_v51 = vsel %vm1354_vm5, %v138_v42, %v149_v45  ;;  %vm221_vm5 = vsmask.f32 7424  ;;  %vm1433_vm12 = vmand %vm80_vm11, %vm70_vm1  ;;  %v1131_v33 = vld [vmem:[#allocation7 + $0x50] sm:$0xff]  }
  0x45   :  { %146 = vst [vmem:[#allocation2] sm:$0xf] %v145_v50  ;;  %148 = vst.msk [vmem:[#allocation2 + $0x4] sm:$0xf] %vm142_vm10, %v137_v49  ;;  %v171_v53 = vrot.slane %v170_v46, 4  ;;  %v188_v54 = vsel %vm1399_vm6, %v170_v46, %v187_v48  ;;  %v181_v55 = vrot.slane %v179_v47, 4  ;;  %381 = vmatpush1.bf16.msra.mxu0 %v1123_v52 }
  0x46   :  { %151 = vst [vmem:[#allocation2 + $0x8] sm:$0x1] %v150_v51  ;;  %189 = vst [vmem:[#allocation2 + $0x8] sm:$0xe] %v188_v54  ;;  %382 = vmatprep.subr.bf16.mxu0 %v1264_v2  ;;  %v1129_v30 = vld [vmem:[#allocation7 + $0x40] sm:$0xff]   ;;  %v83_v31 = vsel %vm1433_vm12, 0, %v82_v28 }
  0x47   :  { %v180_v56 = vsel %vm1392_vm3, %v171_v53, %v179_v47  ;;  %84 = vst [vmem:[#allocation3] sm:$0x1] %v83_v31  ;;  %v1132_v34 = vld [vmem:[#allocation7 + $0x58] sm:$0xff]   ;;  %v1134_v42 = vld [vmem:[#allocation9 + $0x40] sm:$0xff]   ;;  %vm85_vm1 = vmand %vm80_vm11, %vm75_vm2  ;;  %vm100_vm13 = vcmask 1041409   ;;  %vm485_vm3 = vcmask 1043456  }
  0x48   :  { %190 = vst.msk [vmem:[#allocation2 + $0xc] sm:$0xf] %vm142_vm10, %v180_v56  ;;  %v193_v57 = vld [vmem:[#allocation2 + $0x10] sm:$0x3]  ;;  %vm260_vm10 = vcmask 523264   ;;  %1034 = vmatprep.subr.bf16.mxu1 %v1134_v42  ;;  %v1135_v44 = vld [vmem:[#allocation9] sm:$0xff]   ;;  %vm101_vm14 = vmand %vm100_vm13, %vm90_vm4 }
  0x49   :  { %v194_v59 = vsel %vm192_vm7, %v181_v55, %v193_v57  ;;  %383 = vmatpush1.bf16.msra.mxu0 %v1124_v58  ;;  %1035 = vmatpush3.bf16.msra.mxu1 %v1135_v44  ;;  %v1136_v45 = vld [vmem:[#allocation9 + $0x48] sm:$0xff]   ;;  %v102_v47 = vld [vmem:[#allocation3 + $0x8] sm:$0x2]  ;;  %v1140_v51 = vld [vmem:[#allocation9 + $0x58] sm:$0xff]  }
  0x4a   :  { %195 = vst [vmem:[#allocation2 + $0x10] sm:$0x3] %v194_v59  ;;  %384 = vmatprep.subr.bf16.mxu0 %v1264_v2  ;;  %v1137_v46 = vld [vmem:[#allocation9 + $0x8] sm:$0xff]   ;;  %1036 = vmatprep.subr.bf16.mxu1 %v1136_v45  ;;  %v103_v48 = vsel %vm101_vm14, 0, %v102_v47  ;;  %v1138_v49 = vld [vmem:[#allocation9 + $0x50] sm:$0xff]   ;;  %v1141_v52 = vld [vmem:[#allocation9 + $0x18] sm:$0xff]  }
  0x4b   :  { %104 = vst [vmem:[#allocation3 + $0x8] sm:$0x2] %v103_v48  ;;  %v1139_v50 = vld [vmem:[#allocation9 + $0x10] sm:$0xff]   ;;  %vm105_vm0 = vmand %vm100_vm13, %vm95_vm8  ;;  %v106_v53 = vld [vmem:[#allocation3 + $0x10] sm:$0x2] }
  0x4c   :  { %v198_v61 = vld [vmem:[#allocation2] sm:$0xf]  ;;  %v199_v62 = vld [vmem:[#allocation2 + $0x4] sm:$0xf]  ;;  %v1142_v54 = vld [vmem:[#allocation9 + $0x60] sm:$0xff]   ;;  %v107_v55 = vsel %vm105_vm0, 0, %v106_v53 }
  0x4d   :  { %v967_v63 = vcombine.low %v198_v61, %v199_v62  ;;  %v204_v1 = vld [vmem:[#allocation2] sm:$0xe]  ;;  %385 = vmatpush1.bf16.msra.mxu0 %v1125_v60  ;;  %1037 = vmatpush3.bf16.msra.mxu1 %v1137_v46  ;;  %v1143_v56 = vld [vmem:[#allocation9 + $0x20] sm:$0xff]   ;;  %108 = vst [vmem:[#allocation3 + $0x10] sm:$0x2] %v107_v55  ;;  %v1144_v57 = vld [vmem:[#allocation9 + $0x68] sm:$0xff]  }
  0x4e   :  { %v971_v6 = vcombine.low %v204_v1, %v199_v62  ;;  %386 = vmatprep.subr.bf16.mxu0 %v1264_v2  ;;  %1038 = vmatprep.subr.bf16.mxu1 %v1138_v49  ;;  %v1145_v58 = vld [vmem:[#allocation9 + $0x28] sm:$0xff]   ;;  %v1146_v59 = vld [vmem:[#allocation9 + $0x70] sm:$0xff]   ;;  %v1148_v61 = vld [vmem:[#allocation9 + $0x78] sm:$0xff]  }
  0x4f   :  { %v1119_v3 = vld [vmem:[#allocation2 + $0x8] sm:$0xff]   ;;  %v223_v4 = vshrl.u32 %v967_v63, 16  ;;  %v225_v5 = vshll.u32 %v967_v63, 16  ;;  %v1147_v60 = vld [vmem:[#allocation9 + $0x30] sm:$0xff]   ;;  %v1149_v62 = vld [vmem:[#allocation9 + $0x38] sm:$0xff]  }
  0x50   :  { %v230_v8 = vshll.u32 %v1119_v3, 16  ;;  %v234_v9 = vshrl.u32 %v1119_v3, 16  ;;  %v255_v10 = vrot.slane %v971_v6, 1  ;;  %v256_v12 = vrot.slane %v1119_v3, 1  ;;  %v988_v1 = vld [vmem:[%s1516_s4] ss:$0 sm:$0xff]  ;;  %vm486_vm6 = vmand %vm485_vm3, %vm75_vm2 }
  0x51   :  { %v227_v7 = vrot.slane %v225_v5, 1  ;;  %v1120_v11 = vld [vmem:[#allocation2 + $0x10] ss:$0 sps:$4 sm:$0x77]   ;;  %387 = vmatpush1.bf16.msra.mxu0 %v1126_v0  ;;  %1039 = vmatpush3.bf16.msra.mxu1 %v1139_v50  ;;  %v987_v0 = vld [vmem:[%s1515_s3] ss:$0 sm:$0xff] }
  0x52   :  { %v232_v14 = vrot.slane %v230_v8, 1  ;;  %v238_v15 = vshll.u32 %v1120_v11, 16  ;;  %v242_v16 = vshrl.u32 %v1120_v11, 16  ;;  %v257_v18 = vsel %vm254_vm9, %v255_v10, %v256_v12  ;;  %388 = vmatprep.subr.bf16.mxu0 %v1264_v2  ;;  %v1133_v39 = vld [vmem:[#allocation2 + $0x10] ss:$0 sps:$4 sm:$0x33]   ;;  %1040 = vmatprep.subr.bf16.mxu1 %v1140_v51 }
  0x53   :  { %v228_v13 = vor.u32 %v227_v7, %v223_v4  ;;  %v258_v19 = vrot.slane %v1120_v11, 1  ;;  %984 = vmatprep.mubr.msk.bf16.mxu0 %vm260_vm10, %v257_v18  ;;  %vm532_vm2 = vcmask 1043457   ;;  %v534_v51 = vld [vmem:[#allocation3 + $0x8] sm:$0xe] }
  0x54   :  { %v236_v21 = vor.u32 %v234_v9, %v232_v14  ;;  %v240_v22 = vrot.slane %v238_v15, 1  ;;  %vm533_vm7 = vmand %vm532_vm2, %vm95_vm8  ;;  %vm538_vm8 = vcmask 1041408  }
  0x55   :  { %v233_v20 = vsel %vm221_vm5, %v228_v13, %v232_v14  ;;  %v259_v25 = vsel %vm254_vm9, %v256_v12, %v258_v19  ;;  %389 = vmatpush1.bf16.msra.mxu0 %v1127_v17  ;;  %1041 = vmatpush3.bf16.msra.mxu1 %v1141_v52 }
  0x56   :  { %245 = vrot.lane.b32.xlu0 %v233_v20, %s1258_s11  ;;  %v241_v26 = vsel %vm221_vm5, %v236_v21, %v240_v22  ;;  %v244_v27 = vor.u32 %v242_v16, %v240_v22  ;;  %390 = vmatprep.subr.bf16.mxu0 %v1264_v2 }
  0x57   :  { %1042 = vmatprep.subr.bf16.mxu1 %v1142_v54 }
  0x58   :  { %249 = vrot.lane.b32.xlu1 %v244_v27, %s1258_s11 }
  0x59   :  { %391 = vmatpush1.bf16.msra.mxu0 %v1128_v23  ;;  %1043 = vmatpush3.bf16.msra.mxu1 %v1143_v56 }
  0x5a   :  { %247 = vrot.lane.b32.xlu0 %v241_v26, %s1258_s11  ;;  %392 = vmatprep.subr.bf16.mxu0 %v1264_v2  ;;  %v487_v26 = vld [vmem:[#allocation3] sm:$0xf] }
  0x5b   :  { %1044 = vmatprep.subr.bf16.mxu1 %v1144_v57 }
  0x5d   :  { %393 = vmatpush1.bf16.msra.mxu0 %v1129_v30  ;;  %1045 = vmatpush3.bf16.msra.mxu1 %v1145_v58 }
  0x5e   :  { %394 = vmatprep.subr.bf16.mxu0 %v1264_v2  ;;  %1046 = vmatprep.subr.bf16.mxu1 %v1146_v59 }
  0x61   :  { %395 = vmatpush1.bf16.msra.mxu0 %v1130_v32  ;;  %1047 = vmatpush3.bf16.msra.mxu1 %v1147_v60 }
  0x62   :  { %396 = vmatprep.subr.bf16.mxu0 %v1264_v2  ;;  %1048 = vmatprep.subr.bf16.mxu1 %v1148_v61 }
  0x65   :  { %397 = vmatpush1.bf16.msra.mxu0 %v1131_v33  ;;  %1049 = vmatpush3.bf16.msra.mxu1 %v1149_v62 }
  0x66   :  { %398 = vmatprep.subr.bf16.mxu0 %v1264_v2  ;;  %v86_v2 = vld [vmem:[#allocation3 + $0x8] sm:$0x1] }
  0x67   :  { %v87_v43 = vsel %vm85_vm1, 0, %v86_v2 }
  0x68   :  { %88 = vst [vmem:[#allocation3 + $0x8] sm:$0x1] %v87_v43 }
  0x69   :  { %399 = vmatpush1.bf16.msra.mxu0 %v1132_v34 }
  0x6f   :  { %v491_v34 = vld [vmem:[#allocation3 + $0x8] sm:$0x1] }
  0xc8   :  { %v246_v35 = vpop.permute.xlu0 %245 }
  0xc9   :  { %v262_v36 = vsel %vm260_vm10, %v967_v63, %v246_v35  ;;  %v1265_v63 = vmov 0.0  }
  0xca   :  { %409 = vmatmul.mubr.bf16.vlgmr.msra.gmra.mrb[0].mxu0 %v262_v36  ;;  %v250_v40 = vpop.permute.xlu1 %249  ;;  %1079 = vmatprep.subr.bf16.mxu1 %v1265_v63 }
  0xcb   :  { %985 = vmatprep.mubr.msk.bf16.mxu0 %vm260_vm10, %v259_v25  ;;  %v269_v41 = vsel %vm260_vm10, %v1133_v39, %v250_v40 }
  0xcc   :  { %v248_v37 = vpop.permute.xlu0 %247 }
  0xcd   :  { %v265_v38 = vsel %vm260_vm10, %v1119_v3, %v248_v37 }
  0xd2   :  { %417 = vmatmul.mubr.bf16.gmra.mrb[4].mxu0 %v265_v38 }
  0xd3   :  { %986 = vmatprep.mubr.msk.bf16.mxu0 %vm260_vm10, %v258_v19  ;;  %vm539_vm10 = vmand %vm538_vm8, %vm90_vm4  ;;  %vm1266_vm4 = vmmov 0  }
  0xda   :  { %425 = vmatmul.mubr.bf16.gmra.mrb[8].mxu0 %v269_v41 }
 0x19d   :  { %v410_v3 = vpop.f32.mrb[0].mxu0 }
 0x19e   :  { %v438_v4 = vmul.f32 %v987_v0, %v410_v3  ;;  %v412_v5 = vpop.f32.mrb[1].mxu0 }
 0x19f   :  { %v413_v6 = vpop.f32.mrb[2].mxu0 }
 0x1a0   :  { %v449_v7 = vadd.f32 %v988_v1, %v438_v4  ;;  %v439_v8 = vmul.f32 %v987_v0, %v413_v6  ;;  %v415_v9 = vpop.f32.mrb[3].mxu0 }
 0x1a2   :  { %v454_v10 = vmax.f32 %v449_v7, 0.0  ;;  %v450_v11 = vadd.f32 %v988_v1, %v439_v8  ;;  %v540_v8 = vld [vmem:[#allocation3 + $0x10] sm:$0x3] }
 0x1a4   :  { %v1029_v12 = vpack.c.bf16 %v454_v10, %v454_v10  ;;  %v455_v13 = vmax.f32 %v450_v11, 0.0 }
 0x1a5   :  { %v418_v14 = vpop.f32.mrb[4].mxu0 }
 0x1a6   :  { %v466_v15 = vshrl.u32 %v1029_v12, 16  ;;  %v1030_v16 = vpack.c.bf16 %v455_v13, %v455_v13  ;;  %v440_v17 = vmul.f32 %v987_v0, %v418_v14  ;;  %v420_v18 = vpop.f32.mrb[5].mxu0  ;;  %v469_v21 = vshll.u32 %v1029_v12, 16 }
 0x1a7   :  { %v421_v19 = vpop.f32.mrb[6].mxu0  ;;  %v1152_v18 = vld [vmem:[#allocation9 + $0x80] sm:$0xff]  }
 0x1a8   :  { %v468_v20 = vrot.slane %v466_v15, 7  ;;  %v474_v22 = vshrl.u32 %v1030_v16, 16  ;;  %v451_v23 = vadd.f32 %v988_v1, %v440_v17  ;;  %v423_v25 = vpop.f32.mrb[7].mxu0  ;;  %v441_v27 = vmul.f32 %v987_v0, %v421_v19 }
 0x1a9   :  { %v477_v31 = vshll.u32 %v1030_v16, 16 }
 0x1aa   :  { %v471_v28 = vor.u32 %v469_v21, %v468_v20  ;;  %v476_v30 = vrot.slane %v474_v22, 7  ;;  %v456_v32 = vmax.f32 %v451_v23, 0.0  ;;  %v472_v33 = vrot.slane %v468_v20, 4  ;;  %v1153_v21 = vld [vmem:[#allocation9 + $0x88] sm:$0xff]  }
 0x1ab   :  { %v452_v35 = vadd.f32 %v988_v1, %v441_v27  ;;  %v1155_v27 = vld [vmem:[#allocation9 + $0x90] sm:$0xff]  }
 0x1ac   :  { %v488_v36 = vsel %vm486_vm6, %v471_v28, %v487_v26  ;;  %v479_v37 = vor.u32 %v477_v31, %v476_v30  ;;  %v481_v38 = vrot.slane %v476_v30, 4  ;;  %v1031_v39 = vpack.c.bf16 %v456_v32, %v456_v32  ;;  %v1156_v31 = vld [vmem:[#allocation9 + $0x98] sm:$0xff]   ;;  %v1158_v32 = vld [vmem:[#allocation9 + $0xa0] sm:$0xff]  }
 0x1ad   :  { %489 = vst [vmem:[#allocation3] sm:$0xf] %v488_v36  ;;  %v457_v40 = vmax.f32 %v452_v35, 0.0  ;;  %v426_v41 = vpop.f32.mrb[8].mxu0  ;;  %v1160_v35 = vld [vmem:[#allocation9 + $0xb0] sm:$0xff]  }
 0x1ae   :  { %v480_v42 = vsel %vm1378_vm15, %v472_v33, %v479_v37  ;;  %v492_v2 = vsel %vm1433_vm12, %v481_v38, %v491_v34  ;;  %v505_v43 = vshrl.u32 %v1031_v39, 16  ;;  %v428_v44 = vpop.f32.mrb[9].mxu0  ;;  %v442_v46 = vmul.f32 %v987_v0, %v426_v41  ;;  %v1159_v34 = vld [vmem:[#allocation9 + $0xa8] sm:$0xff]   ;;  %v1161_v37 = vld [vmem:[#allocation9 + $0xb8] sm:$0xff]  }
 0x1af   :  { %490 = vst [vmem:[#allocation3 + $0x4] sm:$0xf] %v480_v42  ;;  %493 = vst [vmem:[#allocation3 + $0x8] sm:$0x1] %v492_v2  ;;  %v1032_v45 = vpack.c.bf16 %v457_v40, %v457_v40  ;;  %v429_v47 = vpop.f32.mrb[10].mxu0  ;;  %v508_v49 = vshll.u32 %v1031_v39, 16 }
 0x1b0   :  { %v507_v48 = vrot.slane %v505_v43, 7  ;;  %v430_v50 = vpop.f32.mrb[11].mxu0  ;;  %v453_v53 = vadd.f32 %v988_v1, %v442_v46 }
 0x1b1   :  { %v513_v52 = vshrl.u32 %v1032_v45, 16  ;;  %v516_v29 = vshll.u32 %v1032_v45, 16 }
 0x1b2   :  { %v510_v54 = vor.u32 %v508_v49, %v507_v48  ;;  %v458_v56 = vmax.f32 %v453_v53, 0.0  ;;  %v511_v58 = vrot.slane %v507_v48, 4 }
 0x1b3   :  { %v515_v55 = vrot.slane %v513_v52, 7 }
 0x1b4   :  { %v535_v57 = vsel %vm533_vm7, %v510_v54, %v534_v51  ;;  %v1033_v60 = vpack.c.bf16 %v458_v56, %v458_v56  ;;  %v545_v61 = vld [vmem:[#allocation3] sm:$0xf] }
 0x1b5   :  { %536 = vst [vmem:[#allocation3 + $0x8] sm:$0xe] %v535_v57  ;;  %v518_v59 = vor.u32 %v516_v29, %v515_v55  ;;  %v520_v6 = vrot.slane %v515_v55, 4  ;;  %v551_v36 = vld [vmem:[#allocation3] sm:$0xe] }
 0x1b6   :  { %v1465_v62 = vld [vmem:[#allocation3 + $0x4] sm:$0xf]  ;;  %v522_v3 = vshrl.u32 %v1033_v60, 16  ;;  %v525_v4 = vshll.u32 %v1033_v60, 16 }
 0x1b7   :  { %v519_v0 = vsel %vm1378_vm15, %v511_v58, %v518_v59  ;;  %v994_v5 = vcombine.low %v545_v61, %v1465_v62  ;;  %v998_v38 = vcombine.low %v551_v36, %v1465_v62  ;;  %v1024_v62 = vld [vmem:[%s1518_s6] ss:$0 sm:$0xff] }
 0x1b8   :  { %537 = vst [vmem:[#allocation3 + $0xc] sm:$0xf] %v519_v0  ;;  %v524_v1 = vrot.slane %v522_v3, 7 }
 0x1b9   :  { %v574_v9 = vshll.u32 %v994_v5, 16  ;;  %v572_v14 = vshrl.u32 %v994_v5, 16  ;;  %v600_v40 = vrot.slane %v998_v38, 1 }
 0x1ba   :  { %v527_v7 = vor.u32 %v525_v4, %v524_v1 }
 0x1bb   :  { %v576_v13 = vrot.slane %v574_v9, 1 }
 0x1bc   :  { %v528_v10 = vsel %vm1378_vm15, %v520_v6, %v527_v7 }
 0x1bd   :  { %v541_v11 = vsel %vm539_vm10, %v528_v10, %v540_v8  ;;  %v577_v16 = vor.u32 %v576_v13, %v572_v14 }
 0x1be   :  { %542 = vst [vmem:[#allocation3 + $0x10] sm:$0x3] %v541_v11 }
 0x1bf   :  { %v1151_v12 = vld [vmem:[#allocation3 + $0x8] sm:$0xff]  }
 0x1c0   :  { %v579_v15 = vshll.u32 %v1151_v12, 16  ;;  %v583_v22 = vshrl.u32 %v1151_v12, 16  ;;  %v601_v39 = vrot.slane %v1151_v12, 1 }
 0x1c2   :  { %v581_v17 = vrot.slane %v579_v15, 1  ;;  %v602_v41 = vsel %vm254_vm9, %v600_v40, %v601_v39 }
 0x1c4   :  { %v582_v19 = vsel %vm221_vm5, %v577_v16, %v581_v17  ;;  %v585_v24 = vor.u32 %v583_v22, %v581_v17 }
 0x1c5   :  { %832 = vmatprep.mubr.bf16.mxu1 %v582_v19  ;;  %v1154_v20 = vld [vmem:[#allocation3 + $0x10] ss:$0 sps:$4 sm:$0x77]  }
 0x1c6   :  { %833 = vmatmul.mubr.bf16.vlgmr.msra.gmra.mrb[0].mxu1 %v994_v5  ;;  %v587_v23 = vshll.u32 %v1154_v20, 16  ;;  %v591_v28 = vshrl.u32 %v1154_v20, 16  ;;  %v1157_v33 = vld [vmem:[#allocation3 + $0x10] ss:$0 sps:$4 sm:$0x33]   ;;  %v603_v42 = vrot.slane %v1154_v20, 1 }
 0x1c7   :  { %1080 = vmatpush3.bf16.msra.mxu1 %v1152_v18 }
 0x1c8   :  { %1081 = vmatprep.subr.bf16.mxu1 %v1265_v63  ;;  %v589_v25 = vrot.slane %v587_v23, 1  ;;  %v604_v2 = vsel %vm254_vm9, %v601_v39, %v603_v42 }
 0x1ca   :  { %v590_v26 = vsel %vm221_vm5, %v585_v24, %v589_v25  ;;  %v593_v30 = vor.u32 %v591_v28, %v589_v25 }
 0x1cb   :  { %1082 = vmatpush3.bf16.msra.mxu1 %v1153_v21  ;;  %840 = vmatprep.mubr.bf16.mxu1 %v590_v26 }
 0x1cc   :  { %1083 = vmatprep.subr.bf16.mxu1 %v1265_v63 }
 0x1ce   :  { %841 = vmatmul.mubr.bf16.gmra.mrb[4].mxu1 %v1151_v12 }
 0x1cf   :  { %1084 = vmatpush3.bf16.msra.mxu1 %v1155_v27  ;;  %848 = vmatprep.mubr.bf16.mxu1 %v593_v30 }
 0x1d0   :  { %1085 = vmatprep.subr.bf16.mxu1 %v1265_v63 }
 0x1d3   :  { %1086 = vmatpush3.bf16.msra.mxu1 %v1156_v31 }
 0x1d4   :  { %1087 = vmatprep.subr.bf16.mxu1 %v1265_v63 }
 0x1d6   :  { %849 = vmatmul.mubr.bf16.gmra.mrb[8].mxu1 %v1157_v33 }
 0x1d7   :  { %1088 = vmatpush3.bf16.msra.mxu1 %v1158_v32  ;;  %1095 = vmatprep.mubr.msk.bf16.mxu1 %vm1266_vm4, %v1265_v63 }
 0x1d8   :  { %1089 = vmatprep.subr.bf16.mxu1 %v1265_v63 }
 0x1db   :  { %1090 = vmatpush3.bf16.msra.mxu1 %v1159_v34 }
 0x1dc   :  { %1091 = vmatprep.subr.bf16.mxu1 %v1265_v63 }
 0x1df   :  { %1092 = vmatpush3.bf16.msra.mxu1 %v1160_v35 }
 0x1e0   :  { %1093 = vmatprep.subr.bf16.mxu1 %v1265_v63 }
 0x1e3   :  { %1094 = vmatpush3.bf16.msra.mxu1 %v1161_v37 }
 0x1e6   :  { %1096 = vmatmul.mubr.bf16.vlgmr.msra.gmra.mrb[12].mxu1 %v602_v41 }
 0x1e7   :  { %1099 = vmatprep.mubr.msk.bf16.mxu1 %vm1266_vm4, %v1265_v63 }
 0x1ee   :  { %1100 = vmatmul.mubr.bf16.gmra.mrb[16].mxu1 %v604_v2 }
 0x1ef   :  { %1103 = vmatprep.mubr.msk.bf16.mxu1 %vm1266_vm4, %v1265_v63  ;;  %v1023_v63 = vld [vmem:[%s1517_s5] ss:$0 sm:$0xff]  ;;  %s1267_s5 = smov [#allocation10]  }
 0x1f0   :  { %s950_s6 = sshll.u32 %s1267_s5, 4  ;;  %s951_s6 = int_to_ptr.vmem [resolvable:$true] %s950_s6 }
 0x1f1   :  { %s1229_s21 = scalar_lea.vmem %s951_s6, 512  ;;  %p1234_p11 = scmp.lt.s32.totalorder %s951_s6, %s951_s6 }
 0x1f2   :  { %p1230_p10 = scmp.ne.s32.totalorder %s951_s6, %s1229_s21  ;;  %p1235_p12 = scmp.lt.s32.totalorder %s1229_s21, %s1229_s21 }
 0x1f4   :  { %p1236_p13 = por %p1235_p12, %p1234_p11 }
 0x1f6   :  { %1104 = vmatmul.mubr.bf16.gmra.mrb[20].mxu1 %v603_v42  ;;  %p1237_p0 = pnand %p1236_p13, %p1230_p10 }
 0x299   :  { %v1050_v43 = vpop.f32.mrb[0].mxu1 }
 0x29a   :  { %v1051_v44 = vpop.f32.mrb[1].mxu1 }
 0x29b   :  { %v1052_v45 = vadd.f32 %v1051_v44, %v1050_v43  ;;  %v1053_v46 = vpop.f32.mrb[2].mxu1 }
 0x29c   :  { %v1054_v47 = vpop.f32.mrb[3].mxu1 }
 0x29d   :  { %v1055_v48 = vadd.f32 %v1054_v47, %v1053_v46 }
 0x2a1   :  { %v1056_v49 = vpop.f32.mrb[4].mxu1 }
 0x2a2   :  { %v1057_v50 = vpop.f32.mrb[5].mxu1 }
 0x2a3   :  { %v1058_v51 = vadd.f32 %v1057_v50, %v1056_v49  ;;  %v1059_v52 = vpop.f32.mrb[6].mxu1 }
 0x2a4   :  { %v1060_v53 = vpop.f32.mrb[7].mxu1 }
 0x2a5   :  { %v1061_v54 = vadd.f32 %v1060_v53, %v1059_v52 }
 0x2a9   :  { %v1062_v55 = vpop.f32.mrb[8].mxu1 }
 0x2aa   :  { %v1063_v29 = vpop.f32.mrb[9].mxu1 }
 0x2ab   :  { %v1064_v56 = vadd.f32 %v1063_v29, %v1062_v55  ;;  %v1065_v57 = vpop.f32.mrb[10].mxu1 }
 0x2ac   :  { %v1066_v58 = vpop.f32.mrb[11].mxu1 }
 0x2b9   :  { %v890_v59 = vpop.f32.mrb[12].mxu1 }
 0x2ba   :  { %v891_v60 = vadd.f32 %v1052_v45, %v890_v59  ;;  %v1097_v61 = vpop.f32.mrb[13].mxu1 }
 0x2bb   :  { %v893_v0 = vpop.f32.mrb[14].mxu1 }
 0x2bc   :  { %v918_v3 = vmul.f32 %v1023_v63, %v891_v60  ;;  %v894_v4 = vadd.f32 %v1055_v48, %v893_v0  ;;  %v1098_v5 = vpop.f32.mrb[15].mxu1 }
 0x2be   :  { %v929_v1 = vadd.f32 %v1024_v62, %v918_v3  ;;  %v919_v6 = vmul.f32 %v1023_v63, %v894_v4 }
 0x2c0   :  { %v934_v7 = vmax.f32 %v929_v1, 0.0  ;;  %v930_v8 = vadd.f32 %v1024_v62, %v919_v6 }
 0x2c1   :  { %v898_v9 = vpop.f32.mrb[16].mxu1 }
 0x2c2   :  { %939 = vst [vmem:[#allocation10] sm:$0xff] %v934_v7  ;;  %v935_v10 = vmax.f32 %v930_v8, 0.0  ;;  %v899_v11 = vadd.f32 %v1058_v51, %v898_v9  ;;  %v1101_v12 = vpop.f32.mrb[17].mxu1 }
 0x2c3   :  { %v901_v13 = vpop.f32.mrb[18].mxu1 }
 0x2c4   :  { %940 = vst [vmem:[#allocation10 + $0x8] sm:$0xff] %v935_v10  ;;  %v920_v14 = vmul.f32 %v1023_v63, %v899_v11  ;;  %v902_v15 = vadd.f32 %v1061_v54, %v901_v13  ;;  %v1102_v16 = vpop.f32.mrb[19].mxu1 }
 0x2c6   :  { %v931_v17 = vadd.f32 %v1024_v62, %v920_v14  ;;  %v921_v18 = vmul.f32 %v1023_v63, %v902_v15 }
 0x2c8   :  { %v936_v19 = vmax.f32 %v931_v17, 0.0  ;;  %v932_v20 = vadd.f32 %v1024_v62, %v921_v18 }
 0x2c9   :  { %v906_v21 = vpop.f32.mrb[20].mxu1 }
 0x2ca   :  { %942 = vst [vmem:[#allocation10 + $0xe] sm:$0xfc] %v936_v19  ;;  %v937_v22 = vmax.f32 %v932_v20, 0.0  ;;  %v907_v23 = vadd.f32 %v1064_v56, %v906_v21  ;;  %v1105_v24 = vpop.f32.mrb[21].mxu1 }
 0x2cb   :  { %v909_v25 = vpop.f32.mrb[22].mxu1 }
 0x2cc   :  { %943 = vst [vmem:[#allocation10 + $0x16] sm:$0xff] %v937_v22  ;;  %v922_v26 = vmul.f32 %v1023_v63, %v907_v23  ;;  %v1106_v27 = vpop.f32.mrb[23].mxu1 }
 0x2ce   :  { %v933_v28 = vadd.f32 %v1024_v62, %v922_v26 }
 0x2d0   :  { %v938_v30 = vmax.f32 %v933_v28, 0.0 }
 0x2d2   :  { %944 = vst [vmem:[#allocation10 + $0x1e] sm:$0x3] %v938_v30 }
 0x2d3   :  { %1240 = shalt.err (!%p1237_p0)
}
 0x2d4   :  { %s1241_s24 = scalar_lea.hbm %s1519_s7, 512 }
 0x2d5   :  { %p1242_p1 = scmp.ne.s32.totalorder %s1519_s7, %s1241_s24  ;;  %p1245_p2 = scmp.lt.u32.totalorder %s1241_s24, %s1519_s7 }
 0x2d7   :  { %p1247_p3 = pnand %p1245_p2, %p1242_p1 }
 0x2d9   :  { %1250 = shalt.err (!%p1247_p3)
}
 0x2da   :  { %956 = dma.vmem_to_hbm [thread:$0]  %s951_s6, 512, %s1519_s7, [#allocation6], %s1261_s1, %s1261_s1, %s1262_s25  }
 0x2db   :  { %1255 = dma.done.wait [#allocation6], 512  }
 0x2dc   :  { %1256 = vsyncadd [#allocation6], 4294966784 }
 0x2dd   :  { %960 = vsyncpa [#allocation5], 1 }
 0x2de   :  { %961 = vsyncpa [#allocation8], 1 }
 0x2df   :  { %962 = vsyncpa [#allocation6], 1 }

</bundles_post_ra>
